<compile_context>
chip_gen: v7x
topology: tpu7x:2x2x1
jax: 0.10.0
libtpu: 0.0.40
codegen_flags: <defaults>
</compile_context>

<pallas_src>
import functools

import jax
import jax.numpy as jnp
from jax.experimental import pallas as pl
from jax.experimental.pallas import tpu as pltpu

_LANE = 128     # lane width (last-dim alignment for padded *internal* dims)
_SUBLANE = 8    # sublane width (second-to-last dim alignment, f32)


def _round_up(n, m):
    return ((n + m - 1) // m) * m


def _score_head_kernel(num_layers, *refs):
    """refs = (x_ref, w0, b0, w1, b1, ..., w_{L-1}, b_{L-1}, o_ref)."""
    x_ref = refs[0]
    o_ref = refs[-1]
    param_refs = refs[1:-1]

    h = x_ref[...]                       # native dtype straight into the MXU
    for i in range(num_layers):
        w = param_refs[2 * i][...]
        b = param_refs[2 * i + 1][...]
        # (tile_r, in_i) @ (in_i, out_i) with f32 accumulation on the MXU.
        h = jnp.dot(h, w, preferred_element_type=jnp.float32) + b
        if i < num_layers - 1:
            h = jnp.maximum(h, 0.0)      # ReLU on all but the last layer
    o_ref[...] = h.astype(o_ref.dtype)


def _xla_forward(x2d, weights, biases):
    """Plain-XLA path (used only when rows is tiny and fallback is enabled)."""
    h = x2d
    for i, (w, b) in enumerate(zip(weights, biases)):
        h = jnp.matmul(h, w) + b[0]
        if i < len(weights) - 1:
            h = jax.nn.relu(h)
    return h


def score_head_forward(x, weights, biases, *, tile_rows=1024,
                       xla_fallback_below=0):
    """ScoreHead forward.

    x: (1, bs, num_query, c).  weights[i]: (in_i, out_i).  biases[i]: (1, out_i).
    Returns (bs * num_query, out_last) — matches torch's x.view(-1, 1) when
    out_last == 1.

    xla_fallback_below: if rows < this threshold, skip the Pallas call (the
    fixed pallas_call cost dominates for tiny inputs).  0 disables the
    fallback so the Pallas kernel always runs.
    """
    num_layers = len(weights)
    assert len(biases) == num_layers

    one, bs, nq, c = x.shape
    rows = one * bs * nq
    out_dim = weights[-1].shape[1]
    x2d = x.reshape(rows, c)

    if rows < xla_fallback_below:
        return _xla_forward(x2d, weights, biases)

    in_dims = [w.shape[0] for w in weights]
    out_dims = [w.shape[1] for w in weights]
    assert in_dims[0] == c
    for i in range(num_layers - 1):
        assert out_dims[i] == in_dims[i + 1]

    # Pad only the *internal* hidden feature dims to 128 lanes (keeps the
    # intermediate activations / MXU pushes lane-dense).  Input c and the
    # final out_dim stay at their true sizes: full-extent blocks are legal and
    # this keeps HBM traffic at the true data size.  Zero padding is
    # semantics-neutral (zero cols x zero rows contribute 0; padded bias
    # lanes are 0 and never reach the unpadded output).
    hid_pads = [_round_up(d, _LANE) for d in out_dims[:-1]]
    in_pads = [c] + hid_pads
    out_pads = hid_pads + [out_dim]

    w_p, b_p = [], []
    for w, b, ip, op in zip(weights, biases, in_pads, out_pads):
        w_p.append(jnp.pad(w, ((0, ip - w.shape[0]), (0, op - w.shape[1]))))
        b_p.append(jnp.pad(b, ((0, 0), (0, op - b.shape[1]))))

    # Row tiling: no row padding.  The ragged last block (if any) is safe
    # because rows are independent — OOB reads only feed rows whose writes
    # are dropped by Pallas.  (Do not add cross-row reductions in-kernel.)
    tile_rows = max(_SUBLANE, _round_up(tile_rows, _SUBLANE))
    if rows <= tile_rows:
        tile_r = rows            # single block; equals the full dim -> legal
    else:
        tile_r = tile_rows       # multiple of 8 -> legal
    grid = (pl.cdiv(rows, tile_r),)

    kernel = functools.partial(_score_head_kernel, num_layers)

    # Row-tiled activation / output; tiny weights & biases resident in VMEM
    # across grid steps via constant index_maps (fetched once, not per step).
    in_specs = [pl.BlockSpec((tile_r, c), lambda i: (i, 0))]
    operands = [x2d]
    for w, b in zip(w_p, b_p):
        in_specs.append(pl.BlockSpec(w.shape, lambda i: (0, 0)))
        in_specs.append(pl.BlockSpec(b.shape, lambda i: (0, 0)))
        operands.append(w)
        operands.append(b)

    # Cost estimate from the real (unpadded) problem.
    flops = 2 * rows * sum(i * o for i, o in zip(in_dims, out_dims))
    bytes_accessed = (
        x2d.size * x2d.dtype.itemsize
        + sum(a.size * a.dtype.itemsize for a in w_p + b_p)
        + rows * out_dim * x.dtype.itemsize
    )

    out = pl.pallas_call(
        kernel,
        out_shape=jax.ShapeDtypeStruct((rows, out_dim), x.dtype),
        grid=grid,
        in_specs=in_specs,
        out_specs=pl.BlockSpec((tile_r, out_dim), lambda i: (i, 0)),
        compiler_params=pltpu.CompilerParams(
            # "parallel" lets v7x's two TensorCores split the row tiles; it is
            # a no-op on v5e/v6e (single TensorCore).
            dimension_semantics=("parallel",),
        ),
        cost_estimate=pl.CostEstimate(
            flops=flops, transcendentals=0, bytes_accessed=bytes_accessed),
    )(*operands)

    return out  # (bs*num_query, out_dim) — torch's x.view(-1, 1)


def make_score_head_params(key, input_dim, hidden_dim, output_dim, num_layers,
                           dtype=jnp.float32):
    """Deterministic synthetic init matching nn.Linear layer shapes."""
    hidden_dims = [hidden_dim] * (num_layers - 1)
    in_dims = [input_dim] + hidden_dims
    out_dims = hidden_dims + [output_dim]
    weights, biases = [], []
    for n, k in zip(in_dims, out_dims):
        kw, kb, key = jax.random.split(key, 3)
        # stored as (in, out)  <=>  torch Linear weight (out, in) transposed
        w = (jax.random.normal(kw, (n, k), dtype=jnp.float32) /
             jnp.sqrt(n)).astype(dtype)
        b = (0.01 * jax.random.normal(kb, (1, k), dtype=jnp.float32)).astype(dtype)
        weights.append(w)
        biases.append(b)
    return weights, biases


def _reference_forward(x, weights, biases):
    """Plain-JAX reference mirroring the PyTorch module."""
    num_layers = len(weights)
    h = x
    for i, (w, b) in enumerate(zip(weights, biases)):
        h = jnp.matmul(h, w) + b[0]
        if i < num_layers - 1:
            h = jax.nn.relu(h)
    return h.reshape(-1, weights[-1].shape[1])


if __name__ == "__main__":
    # Small shapes consistent with ScoreHead's forward: x is (1, bs, num_query, c)
    bs, num_query, input_dim, hidden_dim, output_dim, num_layers = 2, 8, 32, 32, 1, 3

    key = jax.random.PRNGKey(0)
    kx, kp = jax.random.split(key)
    x = jax.random.normal(kx, (1, bs, num_query, input_dim), dtype=jnp.float32)
    weights, biases = make_score_head_params(
        kp, input_dim, hidden_dim, output_dim, num_layers)

    out = score_head_forward(x, weights, biases)
    out = jax.block_until_ready(out)

    ref = _reference_forward(x, weights, biases)
    assert out.shape == (bs * num_query, output_dim), out.shape
    assert jnp.allclose(out, ref, atol=1e-5, rtol=1e-5), "mismatch vs reference"

    print("KERNEL_OK")
</pallas_src>

<mosaic_0001>
module attributes {stable_mosaic.version = 11 : i64} {
  func.func @_score_head_kernel(%arg0: i32, %arg1: memref<16x32xf32, #tpu.memory_space<vmem>>, %arg2: memref<32x128xf32, #tpu.memory_space<vmem>>, %arg3: memref<1x128xf32, #tpu.memory_space<vmem>>, %arg4: memref<128x128xf32, #tpu.memory_space<vmem>>, %arg5: memref<1x128xf32, #tpu.memory_space<vmem>>, %arg6: memref<128x1xf32, #tpu.memory_space<vmem>>, %arg7: memref<1x1xf32, #tpu.memory_space<vmem>>, %arg8: memref<16x1xf32, #tpu.memory_space<vmem>>) attributes {dimension_semantics = [#tpu.dimension_semantics<parallel>], iteration_bounds = array<i64: 1>, scalar_prefetch = 0 : i64, scratch_operands = 0 : i64, tpu.core_type = #tpu.core_type<tc>, window_params = [{transform_indices = @transform_0, window_bounds = array<i64: 16, 32>}, {pipeline_mode = #tpu.pipeline_mode<synchronous>, transform_indices = @transform_1, window_bounds = array<i64: 32, 128>}, {pipeline_mode = #tpu.pipeline_mode<synchronous>, transform_indices = @transform_2, window_bounds = array<i64: 1, 128>}, {pipeline_mode = #tpu.pipeline_mode<synchronous>, transform_indices = @transform_3, window_bounds = array<i64: 128, 128>}, {pipeline_mode = #tpu.pipeline_mode<synchronous>, transform_indices = @transform_4, window_bounds = array<i64: 1, 128>}, {pipeline_mode = #tpu.pipeline_mode<synchronous>, transform_indices = @transform_5, window_bounds = array<i64: 128, 1>}, {pipeline_mode = #tpu.pipeline_mode<synchronous>, transform_indices = @transform_6, window_bounds = array<i64: 1, 1>}, {transform_indices = @transform_7, window_bounds = array<i64: 16, 1>}]} {
    %c0 = arith.constant 0 : index
    %c0_0 = arith.constant 0 : index
    %0 = vector.load %arg1[%c0, %c0_0] : memref<16x32xf32, #tpu.memory_space<vmem>>, vector<16x32xf32>
    %c0_1 = arith.constant 0 : index
    %c0_2 = arith.constant 0 : index
    %1 = vector.load %arg2[%c0_1, %c0_2] : memref<32x128xf32, #tpu.memory_space<vmem>>, vector<32x128xf32>
    %c0_3 = arith.constant 0 : index
    %c0_4 = arith.constant 0 : index
    %2 = vector.load %arg3[%c0_3, %c0_4] : memref<1x128xf32, #tpu.memory_space<vmem>>, vector<1x128xf32>
    %cst = arith.constant dense<0.000000e+00> : vector<16x128xf32>
    %3 = tpu.matmul %0, %1, %cst {dimension_numbers = #tpu.dot_dimension_numbers<[1], [0], [0], [1], [0, 0, 1, 1], [], []>} : vector<16x32xf32>, vector<32x128xf32>, vector<16x128xf32> -> vector<16x128xf32>
    %4 = vector.broadcast %2 : vector<1x128xf32> to vector<16x128xf32>
    %5 = arith.addf %3, %4 : vector<16x128xf32>
    %cst_5 = arith.constant 0.000000e+00 : f32
    %6 = vector.broadcast %cst_5 : f32 to vector<16x128xf32>
    %7 = arith.maximumf %5, %6 : vector<16x128xf32>
    %c0_6 = arith.constant 0 : index
    %c0_7 = arith.constant 0 : index
    %8 = vector.load %arg4[%c0_6, %c0_7] : memref<128x128xf32, #tpu.memory_space<vmem>>, vector<128x128xf32>
    %c0_8 = arith.constant 0 : index
    %c0_9 = arith.constant 0 : index
    %9 = vector.load %arg5[%c0_8, %c0_9] : memref<1x128xf32, #tpu.memory_space<vmem>>, vector<1x128xf32>
    %cst_10 = arith.constant dense<0.000000e+00> : vector<16x128xf32>
    %10 = tpu.matmul %7, %8, %cst_10 {dimension_numbers = #tpu.dot_dimension_numbers<[1], [0], [0], [1], [0, 0, 1, 1], [], []>} : vector<16x128xf32>, vector<128x128xf32>, vector<16x128xf32> -> vector<16x128xf32>
    %11 = vector.broadcast %9 : vector<1x128xf32> to vector<16x128xf32>
    %12 = arith.addf %10, %11 : vector<16x128xf32>
    %cst_11 = arith.constant 0.000000e+00 : f32
    %13 = vector.broadcast %cst_11 : f32 to vector<16x128xf32>
    %14 = arith.maximumf %12, %13 : vector<16x128xf32>
    %c0_12 = arith.constant 0 : index
    %c0_13 = arith.constant 0 : index
    %15 = vector.load %arg6[%c0_12, %c0_13] : memref<128x1xf32, #tpu.memory_space<vmem>>, vector<128x1xf32>
    %c0_14 = arith.constant 0 : index
    %c0_15 = arith.constant 0 : index
    %16 = vector.load %arg7[%c0_14, %c0_15] : memref<1x1xf32, #tpu.memory_space<vmem>>, vector<1x1xf32>
    %cst_16 = arith.constant dense<0.000000e+00> : vector<16x1xf32>
    %17 = tpu.matmul %14, %15, %cst_16 {dimension_numbers = #tpu.dot_dimension_numbers<[1], [0], [0], [1], [0, 0, 1, 1], [], []>} : vector<16x128xf32>, vector<128x1xf32>, vector<16x1xf32> -> vector<16x1xf32>
    %18 = vector.broadcast %16 : vector<1x1xf32> to vector<16x1xf32>
    %19 = arith.addf %17, %18 : vector<16x1xf32>
    %c0_17 = arith.constant 0 : index
    %c0_18 = arith.constant 0 : index
    %20 = vector.load %arg8[%c0_17, %c0_18] : memref<16x1xf32, #tpu.memory_space<vmem>>, vector<16x1xf32>
    tpu.vector_store %arg8[%c0_17, %c0_18], %19 {strides = array<i32>} : memref<16x1xf32, #tpu.memory_space<vmem>>, vector<16x1xf32>,
    return
  }
  func.func @transform_0(%arg0: i32) -> (i32, i32) {
    %c0_i32 = arith.constant 0 : i32
    %c0_i32_0 = arith.constant 0 : i32
    return %arg0, %c0_i32 : i32, i32
  }
  func.func @transform_1(%arg0: i32) -> (i32, i32) {
    %c0_i32 = arith.constant 0 : i32
    %c0_i32_0 = arith.constant 0 : i32
    %c0_i32_1 = arith.constant 0 : i32
    return %c0_i32, %c0_i32_0 : i32, i32
  }
  func.func @transform_2(%arg0: i32) -> (i32, i32) {
    %c0_i32 = arith.constant 0 : i32
    %c0_i32_0 = arith.constant 0 : i32
    %c0_i32_1 = arith.constant 0 : i32
    return %c0_i32, %c0_i32_0 : i32, i32
  }
  func.func @transform_3(%arg0: i32) -> (i32, i32) {
    %c0_i32 = arith.constant 0 : i32
    %c0_i32_0 = arith.constant 0 : i32
    %c0_i32_1 = arith.constant 0 : i32
    return %c0_i32, %c0_i32_0 : i32, i32
  }
  func.func @transform_4(%arg0: i32) -> (i32, i32) {
    %c0_i32 = arith.constant 0 : i32
    %c0_i32_0 = arith.constant 0 : i32
    %c0_i32_1 = arith.constant 0 : i32
    return %c0_i32, %c0_i32_0 : i32, i32
  }
  func.func @transform_5(%arg0: i32) -> (i32, i32) {
    %c0_i32 = arith.constant 0 : i32
    %c0_i32_0 = arith.constant 0 : i32
    %c0_i32_1 = arith.constant 0 : i32
    return %c0_i32, %c0_i32_0 : i32, i32
  }
  func.func @transform_6(%arg0: i32) -> (i32, i32) {
    %c0_i32 = arith.constant 0 : i32
    %c0_i32_0 = arith.constant 0 : i32
    %c0_i32_1 = arith.constant 0 : i32
    return %c0_i32, %c0_i32_0 : i32, i32
  }
  func.func @transform_7(%arg0: i32) -> (i32, i32) {
    %c0_i32 = arith.constant 0 : i32
    %c0_i32_0 = arith.constant 0 : i32
    return %arg0, %c0_i32 : i32, i32
  }
}

</mosaic_0001>

<bundles_post_ra>
// kernel: tpu_custom_call.1
= control target key start
LH: loop header
LB: loop body
LE: loop exit
PB: predicated region body
PF: predicated region fallthrough
CT: control target
= control target key end

     0   :  { %s794_s0 = inlined_call_operand.vmem [shape: f32[16,32], index: 0, kind: input, shape index: {}]   ;;  %s795_s1 = inlined_call_operand.hbm [shape: f32[32,128], index: 1, kind: input, shape index: {}]   ;;  %s796_s2 = inlined_call_operand.hbm [shape: f32[1,128], index: 2, kind: input, shape index: {}]   ;;  %s797_s3 = inlined_call_operand.vmem [shape: f32[128,128], index: 3, kind: input, shape index: {}]   ;;  %s798_s4 = inlined_call_operand.vmem [shape: f32[1,128], index: 4, kind: input, shape index: {}]   ;;  %s799_s5 = inlined_call_operand.vmem [shape: f32[128,1], index: 5, kind: input, shape index: {}]   ;;  %s800_s6 = inlined_call_operand.<no memory space> [shape: f32[1,1], index: 6, kind: input, shape index: {}]   ;;  %s801_s7 = inlined_call_operand.vmem [shape: f32[16,1], index: 7, kind: output, shape index: {}]  }
   0x1   :  { %v12_v0 = vstv %s800_s6 }
   0x2   :  { %13 = vst [vmem:[#allocation2] sm:$0x1] %v12_v0 }
   0x3   :  { %14 = vsyncpa [#allocation4], 0 }
   0x4   :  { %15 = vsyncpa [#allocation6], 0  ;;  %s610_s26 = smov [#allocation3]   ;;  %s562_s30 = scalar_lea.hbm %s795_s1, 512 }
   0x5   :  { %s23_s27 = sshll.u32 %s610_s26, 4  ;;  %p563_p0 = scmp.ne.s32.totalorder %s795_s1, %s562_s30  ;;  %s24_s27 = int_to_ptr.vmem [resolvable:$true] %s23_s27 }
   0x6   :  { %p566_p1 = scmp.lt.u32.totalorder %s562_s30, %s795_s1 }
   0x8   :  { %p568_p2 = pnand %p566_p1, %p563_p0 }
   0xa   :  { %571 = shalt.err (!%p568_p2)
}
   0xb   :  { %s572_s6 = scalar_lea.vmem %s24_s27, 512  ;;  %p577_p4 = scmp.lt.s32.totalorder %s24_s27, %s24_s27 }
   0xc   :  { %p573_p3 = scmp.ne.s32.totalorder %s24_s27, %s572_s6  ;;  %p578_p5 = scmp.lt.s32.totalorder %s572_s6, %s572_s6 }
   0xe   :  { %p579_p6 = por %p578_p5, %p577_p4 }
  0x10   :  { %p580_p7 = pnand %p579_p6, %p573_p3 }
  0x12   :  { %583 = shalt.err (!%p580_p7)
}
  0x13   :  { %s611_s12 = smov 128   ;;  %s612_s13 = smov 8  }
  0x14   :  { %29 = dma.hbm_to_vmem [thread:$0]  %s795_s1, 512, %s24_s27, [#allocation4], %s611_s12, %s611_s12, %s612_s13  }
  0x15   :  { %s613_s16 = smov [#allocation5]   ;;  %s584_s20 = scalar_lea.hbm %s796_s2, 16 }
  0x16   :  { %s36_s17 = sshll.u32 %s613_s16, 4  ;;  %p585_p8 = scmp.ne.s32.totalorder %s796_s2, %s584_s20  ;;  %s37_s17 = int_to_ptr.vmem [resolvable:$true] %s36_s17 }
  0x17   :  { %p588_p9 = scmp.lt.u32.totalorder %s584_s20, %s796_s2 }
  0x19   :  { %p590_p10 = pnand %p588_p9, %p585_p8 }
  0x1b   :  { %593 = shalt.err (!%p590_p10)
}
  0x1c   :  { %s594_s25 = scalar_lea.vmem %s37_s17, 16  ;;  %s598_s1 = scalar_lea.vmem %s37_s17, 32 }
  0x1d   :  { %p595_p11 = scmp.ne.s32.totalorder %s37_s17, %s594_s25  ;;  %p599_p12 = scmp.lt.s32.totalorder %s37_s17, %s37_s17 }
  0x1e   :  { %p600_p13 = scmp.lt.s32.totalorder %s598_s1, %s594_s25 }
  0x20   :  { %p601_p0 = por %p600_p13, %p599_p12 }
  0x22   :  { %p602_p1 = pnand %p601_p0, %p595_p11 }
  0x24   :  { %605 = shalt.err (!%p602_p1)
}
  0x25   :  { %39 = dma.hbm_to_vmem [thread:$0]  %s796_s2, 16, %s37_s17, [#allocation6]  }
  0x26   :  { %606 = dma.done.wait [#allocation4], 512  }
  0x27   :  { %607 = vsyncadd [#allocation4], 4294966784 }
  0x28   :  { %608 = dma.done.wait [#allocation6], 16  }
  0x29   :  { %609 = vsyncadd [#allocation6], 4294967280  ;;  %vm67_vm0 = vcmask 261120   ;;  %v56_v1 = vld [vmem:[#allocation3] sm:$0xff]  ;;  %v57_v2 = vld [vmem:[#allocation3 + $0x8] sm:$0xff]  ;;  %vm349_vm1 = vcmask 7168  }
  0x2a   :  { %v58_v3 = vld [vmem:[#allocation3 + $0x10] sm:$0xff]  ;;  %v486_v4 = vpack.c.bf16 %v57_v2, %v56_v1  ;;  %v59_v5 = vld [vmem:[#allocation3 + $0x18] sm:$0xff]  ;;  %v152_v9 = vld [vmem:[%s797_s3 + $0x8] sm:$0xff] }
  0x2b   :  { %v54_v6 = vld [vmem:[%s794_s0] sm:$0xff]  ;;  %v490_v7 = vpack.c.bf16 %v59_v5, %v58_v3  ;;  %v153_v10 = vld [vmem:[%s797_s3 + $0x10] sm:$0xff]  ;;  %v154_v12 = vld [vmem:[%s797_s3 + $0x18] sm:$0xff] }
  0x2c   :  { %413 = vmatprep.mubr.msk.f32.mxu0 %vm67_vm0, %v54_v6  ;;  %v151_v8 = vld [vmem:[%s797_s3] sm:$0xff]  ;;  %487 = vmatprep.subr.bf16.mxu0 %v486_v4  ;;  %v498_v13 = vpack.c.bf16 %v154_v12, %v153_v10  ;;  %v156_v15 = vld [vmem:[%s797_s3 + $0x28] sm:$0xff]  ;;  %v157_v18 = vld [vmem:[%s797_s3 + $0x30] sm:$0xff] }
  0x2d   :  { %v494_v11 = vpack.c.bf16 %v152_v9, %v151_v8  ;;  %489 = vmatpush3.bf16.msra.mxu0 %v486_v4  ;;  %v155_v14 = vld [vmem:[%s797_s3 + $0x20] sm:$0xff]  ;;  %v55_v17 = vld [vmem:[%s794_s0 + $0x8] sm:$0xff]  ;;  %v158_v19 = vld [vmem:[%s797_s3 + $0x38] sm:$0xff] }
  0x2e   :  { %491 = vmatprep.subr.bf16.mxu0 %v490_v7  ;;  %v502_v16 = vpack.c.bf16 %v156_v15, %v155_v14  ;;  %v506_v20 = vpack.c.bf16 %v158_v19, %v157_v18  ;;  %v159_v21 = vld [vmem:[%s797_s3 + $0x40] sm:$0xff]  ;;  %v160_v22 = vld [vmem:[%s797_s3 + $0x48] sm:$0xff]  ;;  %v161_v24 = vld [vmem:[%s797_s3 + $0x50] sm:$0xff] }
  0x2f   :  { %495 = vmatprep.subr.bf16.mxu1 %v494_v11  ;;  %v510_v23 = vpack.c.bf16 %v160_v22, %v159_v21  ;;  %v162_v25 = vld [vmem:[%s797_s3 + $0x58] sm:$0xff]  ;;  %v163_v27 = vld [vmem:[%s797_s3 + $0x60] sm:$0xff]  ;;  %v164_v28 = vld [vmem:[%s797_s3 + $0x68] sm:$0xff] }
  0x30   :  { %497 = vmatpush3.bf16.msra.mxu1 %v494_v11  ;;  %v514_v26 = vpack.c.bf16 %v162_v25, %v161_v24  ;;  %v518_v29 = vpack.c.bf16 %v164_v28, %v163_v27  ;;  %v165_v30 = vld [vmem:[%s797_s3 + $0x70] sm:$0xff]  ;;  %v166_v31 = vld [vmem:[%s797_s3 + $0x78] sm:$0xff]  ;;  %v251_v33 = vld [vmem:[%s799_s5] sm:$0xff] }
  0x31   :  { %499 = vmatprep.subr.bf16.mxu1 %v498_v13  ;;  %493 = vmatpush3.bf16.msra.mxu0 %v490_v7  ;;  %v522_v32 = vpack.c.bf16 %v166_v31, %v165_v30  ;;  %v252_v34 = vld [vmem:[%s799_s5 + $0x8] sm:$0xff]  ;;  %v253_v35 = vld [vmem:[%s799_s5 + $0x10] sm:$0xff]  ;;  %v254_v37 = vld [vmem:[%s799_s5 + $0x18] sm:$0xff] }
  0x32   :  { %v526_v36 = vpack.c.bf16 %v252_v34, %v251_v33  ;;  %v530_v38 = vpack.c.bf16 %v254_v37, %v253_v35  ;;  %v255_v39 = vld [vmem:[%s799_s5 + $0x20] sm:$0xff]  ;;  %v256_v40 = vld [vmem:[%s799_s5 + $0x28] sm:$0xff]  ;;  %v257_v42 = vld [vmem:[%s799_s5 + $0x30] sm:$0xff] }
  0x33   :  { %v534_v41 = vpack.c.bf16 %v256_v40, %v255_v39  ;;  %v258_v43 = vld [vmem:[%s799_s5 + $0x38] sm:$0xff]  ;;  %v259_v45 = vld [vmem:[%s799_s5 + $0x40] sm:$0xff]  ;;  %v260_v46 = vld [vmem:[%s799_s5 + $0x48] sm:$0xff] }
  0x34   :  { %501 = vmatpush3.bf16.msra.mxu1 %v498_v13  ;;  %414 = vmatmul.mubr.msk.f32.vlgmr.msra.gmra.mrb[0].mxu0 %vm67_vm0, %v55_v17  ;;  %v538_v44 = vpack.c.bf16 %v258_v43, %v257_v42  ;;  %v542_v47 = vpack.c.bf16 %v260_v46, %v259_v45  ;;  %v261_v48 = vld [vmem:[%s799_s5 + $0x50] sm:$0xff]  ;;  %v262_v49 = vld [vmem:[%s799_s5 + $0x58] sm:$0xff]  ;;  %v263_v51 = vld [vmem:[%s799_s5 + $0x60] sm:$0xff] }
  0x35   :  { %503 = vmatprep.subr.bf16.mxu1 %v502_v16  ;;  %527 = vmatprep.subr.bf16.mxu0 %v526_v36  ;;  %v546_v50 = vpack.c.bf16 %v262_v49, %v261_v48  ;;  %v264_v52 = vld [vmem:[%s799_s5 + $0x68] sm:$0xff]  ;;  %v358_v54 = vld [vmem:[#allocation5] ss:$0 sm:$0xff]  ;;  %v265_v61 = vld [vmem:[%s799_s5 + $0x70] sm:$0xff] }
  0x36   :  { %529 = vmatpush3.bf16.msra.mxu0 %v526_v36  ;;  %v550_v53 = vpack.c.bf16 %v264_v52, %v263_v51  ;;  %v266_v62 = vld [vmem:[%s799_s5 + $0x78] sm:$0xff]  ;;  %v361_v0 = vld [vmem:[%s798_s4] ss:$0 sm:$0xff] }
  0x37   :  { %531 = vmatprep.subr.bf16.mxu0 %v530_v38  ;;  %v554_v63 = vpack.c.bf16 %v266_v62, %v265_v61  ;;  %v362_v7 = vld [vmem:[#allocation2] ss:$0 sm:$0xff] }
  0x38   :  { %505 = vmatpush3.bf16.msra.mxu1 %v502_v16 }
  0x39   :  { %507 = vmatprep.subr.bf16.mxu1 %v506_v20 }
  0x3a   :  { %533 = vmatpush3.bf16.msra.mxu0 %v530_v38 }
  0x3b   :  { %535 = vmatprep.subr.bf16.mxu0 %v534_v41 }
  0x3c   :  { %509 = vmatpush3.bf16.msra.mxu1 %v506_v20 }
  0x3d   :  { %511 = vmatprep.subr.bf16.mxu1 %v510_v23 }
  0x3e   :  { %537 = vmatpush3.bf16.msra.mxu0 %v534_v41 }
  0x3f   :  { %539 = vmatprep.subr.bf16.mxu0 %v538_v44 }
  0x40   :  { %513 = vmatpush3.bf16.msra.mxu1 %v510_v23 }
  0x41   :  { %515 = vmatprep.subr.bf16.mxu1 %v514_v26 }
  0x42   :  { %541 = vmatpush3.bf16.msra.mxu0 %v538_v44 }
  0x43   :  { %543 = vmatprep.subr.bf16.mxu0 %v542_v47 }
  0x44   :  { %517 = vmatpush3.bf16.msra.mxu1 %v514_v26 }
  0x45   :  { %519 = vmatprep.subr.bf16.mxu1 %v518_v29 }
  0x46   :  { %545 = vmatpush3.bf16.msra.mxu0 %v542_v47 }
  0x47   :  { %547 = vmatprep.subr.bf16.mxu0 %v546_v50 }
  0x48   :  { %521 = vmatpush3.bf16.msra.mxu1 %v518_v29 }
  0x49   :  { %523 = vmatprep.subr.bf16.mxu1 %v522_v32 }
  0x4a   :  { %549 = vmatpush3.bf16.msra.mxu0 %v546_v50 }
  0x4b   :  { %551 = vmatprep.subr.bf16.mxu0 %v550_v53 }
  0x4c   :  { %525 = vmatpush3.bf16.msra.mxu1 %v522_v32 }
  0x4e   :  { %553 = vmatpush3.bf16.msra.mxu0 %v550_v53 }
  0x4f   :  { %555 = vmatprep.subr.bf16.mxu0 %v554_v63 }
  0x52   :  { %557 = vmatpush3.bf16.msra.mxu0 %v554_v63 }
 0x107   :  { %v415_v55 = vpop.f32.mrb[0].mxu0 }
 0x108   :  { %v146_v56 = vadd.f32 %v415_v55, %v358_v54  ;;  %v140_v57 = vpop.f32.mrb[1].mxu0 }
 0x109   :  { %v141_v58 = vadd.f32 %v358_v54, %v140_v57 }
 0x10a   :  { %v150_v60 = vmax.f32 %v146_v56, 0.0 }
 0x10b   :  { %v149_v59 = vmax.f32 %v141_v58, 0.0 }
 0x10d   :  { %448 = vmatprep.mubr.f32.mxu1 %v149_v59 }
 0x10e   :  { %449 = vmatmul.mubr.f32.vlgmr.msra.gmra.mrb[0].mxu1 %v150_v60 }
 0x1e1   :  { %v450_v1 = vpop.f32.mrb[0].mxu1 }
 0x1e2   :  { %v246_v2 = vadd.f32 %v450_v1, %v361_v0  ;;  %v240_v3 = vpop.f32.mrb[1].mxu1 }
 0x1e3   :  { %v241_v4 = vadd.f32 %v361_v0, %v240_v3 }
 0x1e4   :  { %v250_v6 = vmax.f32 %v246_v2, 0.0 }
 0x1e5   :  { %v249_v5 = vmax.f32 %v241_v4, 0.0 }
 0x1e7   :  { %483 = vmatprep.mubr.f32.mxu0 %v249_v5 }
 0x1e8   :  { %484 = vmatmul.mubr.f32.vlgmr.msra.gmra.mrb[2].mxu0 %v250_v6 }
 0x2bb   :  { %v485_v8 = vpop.f32.mrb[2].mxu0 }
 0x2bc   :  { %v346_v9 = vadd.f32 %v485_v8, %v362_v7  ;;  %v340_v10 = vpop.f32.mrb[3].mxu0 }
 0x2bd   :  { %v341_v11 = vadd.f32 %v362_v7, %v340_v10 }
 0x2be   :  { %351 = vst.msk [vmem:[%s801_s7 + $0x8] sm:$0xff] %vm349_vm1, %v346_v9 }
 0x2bf   :  { %350 = vst.msk [vmem:[%s801_s7] sm:$0xff] %vm349_vm1, %v341_v11 }
 0x2c0   :  { %356 = vsyncpa [#allocation4], 1 }
 0x2c1   :  { %357 = vsyncpa [#allocation6], 1 }

</bundles_post_ra>
